<compile_context>
chip_gen: v7x
topology: tpu7x:2x2x1
jax: 0.10.0
libtpu: 0.0.40
codegen_flags: <defaults>
</compile_context>

<pallas_src>
import functools
import math

import jax
import jax.numpy as jnp
from jax.experimental import pallas as pl
from jax.experimental.pallas import tpu as pltpu

BN_EPS = 1e-5
ACT_DTYPE = jnp.bfloat16


def _ru(x, m):
    return ((x + m - 1) // m) * m


# ----------------------------------------------------------------------------
# Pallas kernels
# ----------------------------------------------------------------------------
def _mm_bn_kernel(a_ref, b_ref, s_ref, c_ref, o_ref, acc_ref, *, relu):
    """Tiled matmul (bf16 operands, f32 accum) + folded BN + optional ReLU."""
    k = pl.program_id(2)

    @pl.when(k == 0)
    def _():
        acc_ref[...] = jnp.zeros_like(acc_ref)

    acc_ref[...] += jnp.dot(a_ref[...], b_ref[...],
                            preferred_element_type=jnp.float32)

    @pl.when(k == pl.num_programs(2) - 1)
    def _():
        y = acc_ref[...] * s_ref[...] + c_ref[...]
        if relu:
            y = jnp.maximum(y, 0.0)
        o_ref[...] = y.astype(o_ref.dtype)


def _mm_bn_res_kernel(a_ref, b_ref, s_ref, c_ref, r_ref, o_ref, acc_ref, *, relu):
    """Same as _mm_bn_kernel but with a fused residual add."""
    k = pl.program_id(2)

    @pl.when(k == 0)
    def _():
        acc_ref[...] = jnp.zeros_like(acc_ref)

    acc_ref[...] += jnp.dot(a_ref[...], b_ref[...],
                            preferred_element_type=jnp.float32)

    @pl.when(k == pl.num_programs(2) - 1)
    def _():
        y = acc_ref[...] * s_ref[...] + c_ref[...] + r_ref[...].astype(jnp.float32)
        if relu:
            y = jnp.maximum(y, 0.0)
        o_ref[...] = y.astype(o_ref.dtype)


def _max_kernel(x_ref, o_ref):
    # x_ref: (ntaps, TL, C) -> max over taps, lane-dense (TL, C) output
    o_ref[...] = jnp.max(x_ref[...], axis=0)


def _avg_kernel(x_ref, o_ref, *, denom):
    # x_ref: (1, TS, C); accumulate sums over the S grid axis into (1, 1, C)
    s = pl.program_id(1)

    @pl.when(s == 0)
    def _():
        o_ref[...] = jnp.zeros_like(o_ref)

    o_ref[...] += jnp.sum(x_ref[...].astype(jnp.float32), axis=1, keepdims=True)

    @pl.when(s == pl.num_programs(1) - 1)
    def _():
        o_ref[...] *= (1.0 / denom)


# ----------------------------------------------------------------------------
# Fused matmul wrapper
# ----------------------------------------------------------------------------
def _pick_tk(K):
    kp128 = _ru(K, 128)
    if kp128 <= 2048:
        return kp128          # single K step, no extra padding waste
    cands = [1024, 896, 768, 640, 512, 384, 256]
    return min(cands, key=lambda t: (_ru(K, t), -t))


def _fused_matmul(a, b, scale, bias, residual, relu):
    """a: (M, K), b: (K, Nc), scale/bias: (Nc,), residual: (M, Nc) or None."""
    M, K = a.shape
    _, Nc = b.shape
    TM = 256 if M >= 1024 else 128
    TN = 256 if Nc >= 256 else 128
    TK = _pick_tk(K)
    Mp, Kp, Np = _ru(M, TM), _ru(K, TK), _ru(Nc, TN)

    a_p = jnp.pad(a.astype(jnp.bfloat16), ((0, Mp - M), (0, Kp - K)))
    b_p = jnp.pad(b.astype(jnp.bfloat16), ((0, Kp - K), (0, Np - Nc)))
    s_p = jnp.pad(scale.reshape(1, Nc).astype(jnp.float32),
                  ((0, 0), (0, Np - Nc)))
    c_p = jnp.pad(bias.reshape(1, Nc).astype(jnp.float32),
                  ((0, 0), (0, Np - Nc)))

    grid = (Mp // TM, Np // TN, Kp // TK)
    in_specs = [
        pl.BlockSpec((TM, TK), lambda i, j, k: (i, k)),
        pl.BlockSpec((TK, TN), lambda i, j, k: (k, j)),
        pl.BlockSpec((1, TN), lambda i, j, k: (0, j)),
        pl.BlockSpec((1, TN), lambda i, j, k: (0, j)),
    ]
    out_spec = pl.BlockSpec((TM, TN), lambda i, j, k: (i, j))
    cparams = pltpu.CompilerParams(
        dimension_semantics=("parallel", "parallel", "arbitrary"))

    if residual is None:
        out = pl.pallas_call(
            functools.partial(_mm_bn_kernel, relu=relu),
            out_shape=jax.ShapeDtypeStruct((Mp, Np), ACT_DTYPE),
            grid=grid,
            in_specs=in_specs,
            out_specs=out_spec,
            scratch_shapes=[pltpu.VMEM((TM, TN), jnp.float32)],
            compiler_params=cparams,
        )(a_p, b_p, s_p, c_p)
    else:
        r_p = jnp.pad(residual.astype(ACT_DTYPE), ((0, Mp - M), (0, Np - Nc)))
        out = pl.pallas_call(
            functools.partial(_mm_bn_res_kernel, relu=relu),
            out_shape=jax.ShapeDtypeStruct((Mp, Np), ACT_DTYPE),
            grid=grid,
            in_specs=in_specs + [pl.BlockSpec((TM, TN), lambda i, j, k: (i, j))],
            out_specs=out_spec,
            scratch_shapes=[pltpu.VMEM((TM, TN), jnp.float32)],
            compiler_params=cparams,
        )(a_p, b_p, s_p, c_p, r_p)
    return out[:M, :Nc]


# ----------------------------------------------------------------------------
# conv3d + BN + (residual) + (ReLU), maxpool3d, global avgpool (channels-last)
# ----------------------------------------------------------------------------
@functools.partial(jax.jit, static_argnames=("stride", "padding", "relu"))
def conv3d_bn_act(x, w, scale, bias, residual, *, stride, padding, relu):
    # x: (N, D, H, W, C) channels-last;  w: (Cout, Cin, kT, kH, kW) (PyTorch)
    N, D, H, W, C = x.shape
    Cout, Cin, kT, kH, kW = w.shape
    sT, sH, sW = stride
    pT, pH, pW = padding
    Do = (D + 2 * pT - kT) // sT + 1
    Ho = (H + 2 * pH - kH) // sH + 1
    Wo = (W + 2 * pW - kW) // sW + 1
    M = N * Do * Ho * Wo

    if (kT, kH, kW) == (1, 1, 1):
        # pointwise conv: channels-last makes this a free reshape (or a
        # strided slice for the downsample path)
        xs = x if (sT, sH, sW) == (1, 1, 1) else x[:, ::sT, ::sH, ::sW, :]
        patches = xs.reshape(M, C)
        wmat = w.reshape(Cout, Cin).T
    else:
        # TODO(synk): spatial/temporal convs still materialize im2col patches
        # (kT*kH*kW inflation); channels-last at least keeps this transpose-free.
        xp = jnp.pad(x, ((0, 0), (pT, pT), (pH, pH), (pW, pW), (0, 0)))
        cols = []
        for it in range(kT):
            for ih in range(kH):
                for iw in range(kW):
                    cols.append(xp[:, it:it + sT * Do:sT,
                                   ih:ih + sH * Ho:sH,
                                   iw:iw + sW * Wo:sW, :])
        patches = jnp.concatenate(cols, axis=-1).reshape(M, kT * kH * kW * C)
        # K ordering: taps major, channel minor (matches the concat above)
        wmat = w.transpose(2, 3, 4, 1, 0).reshape(kT * kH * kW * Cin, Cout)

    res_mat = None if residual is None else residual.reshape(M, Cout)
    out = _fused_matmul(patches, wmat, scale, bias, res_mat, relu)
    return out.reshape(N, Do, Ho, Wo, Cout)


@functools.partial(jax.jit, static_argnames=("ksize", "stride"))
def maxpool3d(x, *, ksize, stride):
    # x: (N, D, H, W, C) channels-last
    N, D, H, W, C = x.shape
    kT, kH, kW = ksize
    sT, sH, sW = stride
    Do = (D - kT) // sT + 1
    Ho = (H - kH) // sH + 1
    Wo = (W - kW) // sW + 1
    L = N * Do * Ho * Wo
    ntaps = kT * kH * kW

    cols = []
    for it in range(kT):
        for ih in range(kH):
            for iw in range(kW):
                cols.append(x[:, it:it + sT * Do:sT,
                              ih:ih + sH * Ho:sH,
                              iw:iw + sW * Wo:sW, :].reshape(1, L, C))
    stk = jnp.concatenate(cols, axis=0)  # (ntaps, L, C)

    TL = min(_ru(L, 8), 1024)
    Lp = _ru(L, TL)
    neg = float(jnp.finfo(x.dtype).min)
    stk = jnp.pad(stk, ((0, 0), (0, Lp - L), (0, 0)), constant_values=neg)

    out = pl.pallas_call(
        _max_kernel,
        out_shape=jax.ShapeDtypeStruct((Lp, C), x.dtype),
        grid=(Lp // TL,),
        in_specs=[pl.BlockSpec((ntaps, TL, C), lambda l: (0, l, 0))],
        out_specs=pl.BlockSpec((TL, C), lambda l: (l, 0)),
        compiler_params=pltpu.CompilerParams(
            dimension_semantics=("parallel",)),
    )(stk)
    return out[:L].reshape(N, Do, Ho, Wo, C)


@jax.jit
def global_avgpool(x):
    # x: (N, D, H, W, C) -> (N, C, 1, 1, 1) float32 (lane-dense channel output)
    N, D, H, W, C = x.shape
    S = D * H * W
    xr = x.reshape(N, S, C)
    TS = min(_ru(S, 8), 512)
    Sp = _ru(S, TS)
    xr = jnp.pad(xr, ((0, 0), (0, Sp - S), (0, 0)))

    out = pl.pallas_call(
        functools.partial(_avg_kernel, denom=float(S)),
        out_shape=jax.ShapeDtypeStruct((N, 1, C), jnp.float32),
        grid=(N, Sp // TS),
        in_specs=[pl.BlockSpec((1, TS, C), lambda n, s: (n, s, 0))],
        out_specs=pl.BlockSpec((1, 1, C), lambda n, s: (n, 0, 0)),
        compiler_params=pltpu.CompilerParams(
            dimension_semantics=("parallel", "arbitrary")),
    )(xr)
    return out.reshape(N, C, 1, 1, 1)


# ----------------------------------------------------------------------------
# Parameter init (deterministic, mirrors the PyTorch __init__ shapes)
# ----------------------------------------------------------------------------
LAYER_CFGS = (
    dict(planes=64,  blocks=3, stride=1, temp_conv=(1, 1, 1),          temp_stride=(1, 1, 1)),
    dict(planes=128, blocks=4, stride=2, temp_conv=(1, 0, 1, 0),       temp_stride=(1, 1, 1, 1)),
    dict(planes=256, blocks=6, stride=2, temp_conv=(1, 0, 1, 0, 1, 0), temp_stride=(1, 1, 1, 1, 1, 1)),
    dict(planes=512, blocks=3, stride=2, temp_conv=(0, 1, 0),          temp_stride=(1, 1, 1)),
)


def _conv_w(key, cout, cin, kt, kh, kw):
    fan_out = cout * kt * kh * kw            # kaiming_normal_, mode='fan_out'
    std = math.sqrt(2.0 / fan_out)
    return std * jax.random.normal(key, (cout, cin, kt, kh, kw), jnp.float32)


def _bn(c):
    # eval-mode BN folded into (scale, bias): gamma=1, beta=0, mean=0, var=1
    scale = jnp.full((c,), 1.0 / math.sqrt(1.0 + BN_EPS), jnp.float32)
    bias = jnp.zeros((c,), jnp.float32)
    return scale, bias


def init_params(key):
    counter = [0]

    def nk():
        counter[0] += 1
        return jax.random.fold_in(key, counter[0])

    params = {}
    params["conv1_w"] = _conv_w(nk(), 64, 3, 5, 7, 7)
    params["bn1_s"], params["bn1_b"] = _bn(64)

    inplanes = 64
    layers = []
    for cfg in LAYER_CFGS:
        planes, blocks = cfg["planes"], cfg["blocks"]
        stride, tc, ts = cfg["stride"], cfg["temp_conv"], cfg["temp_stride"]
        blk_list = []
        for i in range(blocks):
            in_c = inplanes if i == 0 else planes * 4
            bp = {}
            if i == 0 and (stride != 1 or inplanes != planes * 4 or ts[0] != 1):
                bp["dw"] = _conv_w(nk(), planes * 4, in_c, 1, 1, 1)
                bp["ds"], bp["db"] = _bn(planes * 4)
            kt = 1 + 2 * tc[i]
            bp["w1"] = _conv_w(nk(), planes, in_c, kt, 1, 1)
            bp["s1"], bp["b1"] = _bn(planes)
            bp["w2"] = _conv_w(nk(), planes, planes, 1, 3, 3)
            bp["s2"], bp["b2"] = _bn(planes)
            bp["w3"] = _conv_w(nk(), planes * 4, planes, 1, 1, 1)
            bp["s3"], bp["b3"] = _bn(planes * 4)
            blk_list.append(bp)
        inplanes = planes * 4
        layers.append(blk_list)
    params["layers"] = layers
    return params


# ----------------------------------------------------------------------------
# Forward pass (channels-last internally)
# ----------------------------------------------------------------------------
def bottleneck_forward(bp, x, stride, temp_conv, temp_stride):
    if "dw" in bp:
        residual = conv3d_bn_act(x, bp["dw"], bp["ds"], bp["db"], None,
                                 stride=(temp_stride, stride, stride),
                                 padding=(0, 0, 0), relu=False)
    else:
        residual = x
    out = conv3d_bn_act(x, bp["w1"], bp["s1"], bp["b1"], None,
                        stride=(temp_stride, 1, 1),
                        padding=(temp_conv, 0, 0), relu=True)
    out = conv3d_bn_act(out, bp["w2"], bp["s2"], bp["b2"], None,
                        stride=(1, stride, stride),
                        padding=(0, 1, 1), relu=True)
    # conv3 + bn3 + residual add + relu fused into one Pallas kernel
    out = conv3d_bn_act(out, bp["w3"], bp["s3"], bp["b3"], residual,
                        stride=(1, 1, 1), padding=(0, 0, 0), relu=True)
    return out


def i3res50_forward(params, frames):
    # frames: (N, C, D, H, W) -> channels-last bf16 once, at the entry
    x = jnp.transpose(frames, (0, 2, 3, 4, 1)).astype(ACT_DTYPE)
    x = conv3d_bn_act(x, params["conv1_w"], params["bn1_s"],
                      params["bn1_b"], None,
                      stride=(2, 2, 2), padding=(2, 3, 3), relu=True)
    x = maxpool3d(x, ksize=(2, 3, 3), stride=(2, 2, 2))
    for li, (cfg, blk_list) in enumerate(zip(LAYER_CFGS, params["layers"])):
        if li == 1:  # maxpool2 sits between layer1 and layer2
            x = maxpool3d(x, ksize=(2, 1, 1), stride=(2, 1, 1))
        for i, bp in enumerate(blk_list):
            blk_stride = cfg["stride"] if i == 0 else 1
            x = bottleneck_forward(bp, x, blk_stride,
                                   cfg["temp_conv"][i], cfg["temp_stride"][i])
    return global_avgpool(x)


if __name__ == "__main__":
    key = jax.random.PRNGKey(0)
    params = init_params(key)

    # small input: batch=2, 3 channels, 8 frames, 16x16 spatial
    frames = jax.random.normal(jax.random.fold_in(key, 10_000),
                               (2, 3, 8, 16, 16), jnp.float32)
    batch = {"frames": frames}

    # mimic PyTorch forward(): only run when frames.dim() == 5
    if batch["frames"].ndim == 5:
        feat = i3res50_forward(params, batch["frames"])

    feat = jax.block_until_ready(feat)
    assert feat.shape == (2, 2048, 1, 1, 1), feat.shape
    assert bool(jnp.all(jnp.isfinite(feat)))
    print("KERNEL_OK")
</pallas_src>

<mosaic_0001>
module attributes {stable_mosaic.version = 11 : i64} {
  func.func @_mm_bn_kernel(%arg0: i32, %arg1: i32, %arg2: i32, %arg3: memref<128x768xbf16, #tpu.memory_space<vmem>>, %arg4: memref<768x128xbf16, #tpu.memory_space<vmem>>, %arg5: memref<1x128xf32, #tpu.memory_space<vmem>>, %arg6: memref<1x128xf32, #tpu.memory_space<vmem>>, %arg7: memref<128x128xbf16, #tpu.memory_space<vmem>>, %arg8: memref<128x128xf32, #tpu.memory_space<vmem>>) attributes {dimension_semantics = [#tpu.dimension_semantics<parallel>, #tpu.dimension_semantics<parallel>, #tpu.dimension_semantics<arbitrary>], iteration_bounds = array<i64: 4, 1, 1>, scalar_prefetch = 0 : i64, scratch_operands = 1 : i64, tpu.core_type = #tpu.core_type<tc>, window_params = [{transform_indices = @transform_0, window_bounds = array<i64: 128, 768>}, {transform_indices = @transform_1, window_bounds = array<i64: 768, 128>}, {transform_indices = @transform_2, window_bounds = array<i64: 1, 128>}, {transform_indices = @transform_3, window_bounds = array<i64: 1, 128>}, {transform_indices = @transform_4, window_bounds = array<i64: 128, 128>}]} {
    %c0_i32 = arith.constant 0 : i32
    %0 = arith.cmpi eq, %arg2, %c0_i32 : i32
    %1 = arith.extui %0 : i1 to i32
    %c0_i32_0 = arith.constant 0 : i32
    %2 = arith.cmpi ne, %1, %c0_i32_0 : i32
    scf.if %2 {
      %cst_10 = arith.constant 0.000000e+00 : f32
      %12 = vector.broadcast %cst_10 : f32 to vector<128x128xf32>
      %c0_11 = arith.constant 0 : index
      %c0_12 = arith.constant 0 : index
      %13 = vector.load %arg8[%c0_11, %c0_12] : memref<128x128xf32, #tpu.memory_space<vmem>>, vector<128x128xf32>
      tpu.vector_store %arg8[%c0_11, %c0_12], %12 {strides = array<i32>} : memref<128x128xf32, #tpu.memory_space<vmem>>, vector<128x128xf32>,
    } else {
    }
    %c0 = arith.constant 0 : index
    %c0_1 = arith.constant 0 : index
    %3 = vector.load %arg8[%c0, %c0_1] : memref<128x128xf32, #tpu.memory_space<vmem>>, vector<128x128xf32>
    %c0_2 = arith.constant 0 : index
    %c0_3 = arith.constant 0 : index
    %4 = vector.load %arg3[%c0_2, %c0_3] : memref<128x768xbf16, #tpu.memory_space<vmem>>, vector<128x768xbf16>
    %c0_4 = arith.constant 0 : index
    %c0_5 = arith.constant 0 : index
    %5 = vector.load %arg4[%c0_4, %c0_5] : memref<768x128xbf16, #tpu.memory_space<vmem>>, vector<768x128xbf16>
    %cst = arith.constant dense<0.000000e+00> : vector<128x128xf32>
    %6 = tpu.matmul %4, %5, %cst {dimension_numbers = #tpu.dot_dimension_numbers<[1], [0], [0], [1], [0, 0, 1, 1], [], []>} : vector<128x768xbf16>, vector<768x128xbf16>, vector<128x128xf32> -> vector<128x128xf32>
    %7 = arith.addf %3, %6 : vector<128x128xf32>
    %c0_6 = arith.constant 0 : index
    %c0_7 = arith.constant 0 : index
    %8 = vector.load %arg8[%c0_6, %c0_7] : memref<128x128xf32, #tpu.memory_space<vmem>>, vector<128x128xf32>
    tpu.vector_store %arg8[%c0_6, %c0_7], %7 {strides = array<i32>} : memref<128x128xf32, #tpu.memory_space<vmem>>, vector<128x128xf32>,
    %c0_i32_8 = arith.constant 0 : i32
    %9 = arith.cmpi eq, %arg2, %c0_i32_8 : i32
    %10 = arith.extui %9 : i1 to i32
    %c0_i32_9 = arith.constant 0 : i32
    %11 = arith.cmpi ne, %10, %c0_i32_9 : i32
    scf.if %11 {
      %c0_10 = arith.constant 0 : index
      %c0_11 = arith.constant 0 : index
      %12 = vector.load %arg8[%c0_10, %c0_11] : memref<128x128xf32, #tpu.memory_space<vmem>>, vector<128x128xf32>
      %c0_12 = arith.constant 0 : index
      %c0_13 = arith.constant 0 : index
      %13 = vector.load %arg5[%c0_12, %c0_13] : memref<1x128xf32, #tpu.memory_space<vmem>>, vector<1x128xf32>
      %14 = vector.broadcast %13 : vector<1x128xf32> to vector<128x128xf32>
      %15 = arith.mulf %12, %14 : vector<128x128xf32>
      %c0_14 = arith.constant 0 : index
      %c0_15 = arith.constant 0 : index
      %16 = vector.load %arg6[%c0_14, %c0_15] : memref<1x128xf32, #tpu.memory_space<vmem>>, vector<1x128xf32>
      %17 = vector.broadcast %16 : vector<1x128xf32> to vector<128x128xf32>
      %18 = arith.addf %15, %17 : vector<128x128xf32>
      %cst_16 = arith.constant 0.000000e+00 : f32
      %19 = vector.broadcast %cst_16 : f32 to vector<128x128xf32>
      %20 = arith.maximumf %18, %19 : vector<128x128xf32>
      %21 = arith.truncf %20 : vector<128x128xf32> to vector<128x128xbf16>
      %c0_17 = arith.constant 0 : index
      %c0_18 = arith.constant 0 : index
      %22 = vector.load %arg7[%c0_17, %c0_18] : memref<128x128xbf16, #tpu.memory_space<vmem>>, vector<128x128xbf16>
      tpu.vector_store %arg7[%c0_17, %c0_18], %21 {strides = array<i32>} : memref<128x128xbf16, #tpu.memory_space<vmem>>, vector<128x128xbf16>,
    } else {
    }
    return
  }
  func.func @transform_0(%arg0: i32, %arg1: i32, %arg2: i32) -> (i32, i32) {
    %c0_i32 = arith.constant 0 : i32
    return %arg0, %arg2 : i32, i32
  }
  func.func @transform_1(%arg0: i32, %arg1: i32, %arg2: i32) -> (i32, i32) {
    %c0_i32 = arith.constant 0 : i32
    return %arg2, %arg1 : i32, i32
  }
  func.func @transform_2(%arg0: i32, %arg1: i32, %arg2: i32) -> (i32, i32) {
    %c0_i32 = arith.constant 0 : i32
    %c0_i32_0 = arith.constant 0 : i32
    return %c0_i32, %arg1 : i32, i32
  }
  func.func @transform_3(%arg0: i32, %arg1: i32, %arg2: i32) -> (i32, i32) {
    %c0_i32 = arith.constant 0 : i32
    %c0_i32_0 = arith.constant 0 : i32
    return %c0_i32, %arg1 : i32, i32
  }
  func.func @transform_4(%arg0: i32, %arg1: i32, %arg2: i32) -> (i32, i32) {
    %c0_i32 = arith.constant 0 : i32
    return %arg0, %arg1 : i32, i32
  }
}

</mosaic_0001>

<bundles_post_ra>
// kernel: conv3d_bn_act.1
= control target key start
LH: loop header
LB: loop body
LE: loop exit
PB: predicated region body
PF: predicated region fallthrough
CT: control target
= control target key end

     0   :  { %9 = vsyncpa [#allocation4], 0  ;;  %s2726_s0 = inlined_call_operand.vmem [shape: bf16[512,768], index: 0, kind: input, shape index: {}]   ;;  %s2727_s1 = inlined_call_operand.vmem [shape: bf16[768,128], index: 1, kind: input, shape index: {}]   ;;  %s2728_s2 = inlined_call_operand.vmem [shape: f32[1,128], index: 2, kind: input, shape index: {}]   ;;  %s2729_s3 = inlined_call_operand.vmem [shape: f32[1,128], index: 3, kind: input, shape index: {}]   ;;  %s2730_s4 = inlined_call_operand.hbm [shape: bf16[512,128], index: 4, kind: output, shape index: {}]  }
   0x1   :  { %11 = vsyncpa [#allocation4 + $0x1], 0  ;;  %s2319_s15 = smov 0   ;;  %s2321_s16 = smov 0  }
   0x2   :  { %s2323_s17 = smov 0   ;;  %s2325_s18 = smov 0  }
   0x3   :  { %s2327_s19 = smov 0   ;;  %s2329_s20 = smov 0  }
   0x4 LB: > { %s1631_s21 = sadd.s32 4294967295, %s2289_s20   ;;  %s1632_s22 = sadd.s32 4294967294, %s2289_s20   ;;  %s2289_s20 = sphi %s2329_s20, %s17_s20   ;;  %s2285_s19 = sphi %s2327_s19, %s2737_s19   ;;  %s2281_s18 = sphi %s2325_s18, %s2736_s18   ;;  %s2277_s17 = sphi %s2323_s17, %s2735_s17   ;;  %s2273_s16 = sphi %s2321_s16, %s2734_s16   ;;  %s2269_s15 = sphi %s2319_s15, %s2733_s15  }
   0x5   : > { %s36_s23 = sadd.s32 1, %s2285_s19  ;;  %s153_s24 = sadd.s32 1, %s2277_s17 }
   0x6   : > { %p38_p0 = scmp.ge.s32.totalorder %s36_s23, 4  ;;  %p163_p1 = scmp.ne.s32.totalorder %s2277_s17, %s2273_s16 }
   0x7   : > { %p164_p2 = scmp.eq.s32.totalorder %s1631_s21, 3  ;;  %p169_p3 = scmp.ne.s32.totalorder %s2273_s16, %s2269_s15 }
   0x8   : > { %s2739_s23 = smov (%p38_p0, %s36_s23), 0  ;;  %p170_p5 = scmp.eq.s32.totalorder %s1632_s22, 3 }
   0x9   : > { %p2359_p4 = por %p164_p2, %p163_p1  ;;  %s148_s26 = ssub.s32 %s2285_s19, %s2739_s23 }
   0xa   : > { %p1638_p6 = scmp.ge.s32.totalorder %s2289_s20, 1  ;;  %p151_p7 = scmp.eq.s32.totalorder %s148_s26, 0 }
   0xb   : > { %p2366_p8 = por %p170_p5, %p169_p3  ;;  %p227_p9 = scmp.lt.s32.totalorder %s2289_s20, 5 }
   0xc   : > { %s2372_s28 = scalar_select %p151_p7, %s2277_s17, %s153_s24  }
   0xd   : > { %p228_p10 = pnand %p1638_p6, %p227_p9 }
   0xe   : > { %v2091_v0 = vld [vmem:[%s2727_s1 + $0x40] sm:$0xff] (!%p228_p10)   ;;  %s1640_s5 = sshll.u32 (!%p228_p10), %s2281_s18, 4  ;;  %v2093_v2 = vld [vmem:[%s2727_s1 + $0x48] sm:$0xff] (!%p228_p10)   ;;  %v2095_v4 = vld [vmem:[%s2727_s1 + $0x50] sm:$0xff] (!%p228_p10)   ;;  %s269_s22 = sand.u32 (!%p228_p10), 1, %s2273_s16  }
   0xf   : > { %231 = sbr.rel (%p228_p10) target bundleno = 379 (0x17b), region = 36  ;;  %v2092_v1 = vld [vmem:[%s2727_s1] sm:$0xff] (!%p228_p10)   ;;  %1825 = vmatprep.subr.bf16.mxu0 (!%p228_p10), %v2091_v0  ;;  %2017 = vmatprep.subr.bf16.mxu1 (!%p228_p10), %v2091_v0  ;;  %p274_p11 = scmp.lt.s32.totalorder (!%p228_p10), %s1640_s5, 63  ;;  %v2094_v3 = vld [vmem:[%s2727_s1 + $0x8] sm:$0xff] (!%p228_p10)   ;;  %v2096_v5 = vld [vmem:[%s2727_s1 + $0x10] sm:$0xff] (!%p228_p10)  }
  0x10   : > { %1826 = vmatpush3.bf16.msra.mxu0 (!%p228_p10), %v2092_v1  ;;  %2025 = vmatpush3.bf16.msra.mxu1 (!%p228_p10), %v2092_v1  ;;  %v2097_v6 = vld [vmem:[%s2727_s1 + $0x58] sm:$0xff] (!%p228_p10)   ;;  %v2099_v8 = vld [vmem:[%s2727_s1 + $0x60] sm:$0xff] (!%p228_p10)   ;;  %v2101_v10 = vld [vmem:[%s2727_s1 + $0x68] sm:$0xff] (!%p228_p10)   ;;  %s1639_s24 = sshll.u32 (!%p228_p10), %s269_s22, 6  ;;  %s1777_s29 = sshll.u32 (!%p228_p10), %s2281_s18, 10 }
  0x11   : > { %1827 = vmatprep.subr.bf16.mxu0 (!%p228_p10), %v2093_v2  ;;  %2018 = vmatprep.subr.bf16.mxu1 (!%p228_p10), %v2093_v2  ;;  %v2098_v7 = vld [vmem:[%s2727_s1 + $0x18] sm:$0xff] (!%p228_p10)   ;;  %v2100_v9 = vld [vmem:[%s2727_s1 + $0x20] sm:$0xff] (!%p228_p10)   ;;  %v2102_v13 = vld [vmem:[%s2727_s1 + $0x28] sm:$0xff] (!%p228_p10)   ;;  %s2673_s8 = scalar_lea.hbm (!%p228_p10), %s2730_s4, %s1777_s29  ;;  %s2680_s9 = scalar_lea.sflag (!%p228_p10), [#allocation4], %s269_s22 }
  0x12   : > { %v2103_v14 = vld [vmem:[%s2727_s1 + $0x70] sm:$0xff] (!%p228_p10)   ;;  %v2105_v16 = vld [vmem:[%s2727_s1 + $0x78] sm:$0xff] (!%p228_p10)   ;;  %v2113_v20 = vld [vmem:[%s2727_s1 + $0xc0] sm:$0xff] (!%p228_p10)   ;;  %s2291_s18 = smov (!%p228_p10), [#allocation3]  }
  0x13   : > { %v2104_v15 = vld [vmem:[%s2727_s1 + $0x30] sm:$0xff] (!%p228_p10)   ;;  %v2106_v17 = vld [vmem:[%s2727_s1 + $0x38] sm:$0xff] (!%p228_p10)   ;;  %v2114_v21 = vld [vmem:[%s2727_s1 + $0x140] sm:$0xff] (!%p228_p10)   ;;  %s2215_s11 = sshll.u32 (!%p228_p10), %s2291_s18, 4  ;;  %s2216_s11 = int_to_ptr.vmem [resolvable:$false] %s2215_s11 }
  0x14   : > { %1828 = vmatpush3.bf16.msra.mxu0 (!%p228_p10), %v2094_v3  ;;  %2026 = vmatpush3.bf16.msra.mxu1 (!%p228_p10), %v2094_v3  ;;  %v2115_v22 = vld [vmem:[%s2727_s1 + $0x80] sm:$0xff] (!%p228_p10)   ;;  %v2117_v24 = vld [vmem:[%s2727_s1 + $0xc8] sm:$0xff] (!%p228_p10)   ;;  %v2127_v30 = vld [vmem:[%s2727_s1 + $0xd0] sm:$0xff] (!%p228_p10)   ;;  %s2217_s12 = scalar_lea.vmem (!%p228_p10), %s2216_s11, 2048 }
  0x15   : > { %1829 = vmatprep.subr.bf16.mxu0 (!%p228_p10), %v2095_v4  ;;  %2019 = vmatprep.subr.bf16.mxu1 (!%p228_p10), %v2095_v4  ;;  %v2116_v23 = vld [vmem:[%s2727_s1 + $0x100] sm:$0xff] (!%p228_p10)   ;;  %v2118_v25 = vld [vmem:[%s2727_s1 + $0x148] sm:$0xff] (!%p228_p10)   ;;  %v2128_v32 = vld [vmem:[%s2727_s1 + $0x150] sm:$0xff] (!%p228_p10)  }
  0x16   : > { %s2741_s5 = smov (!%p274_p11, %s1640_s5), 63  ;;  %v2119_v27 = vld [vmem:[%s2727_s1 + $0x88] sm:$0xff]   ;;  %v2129_v34 = vld [vmem:[%s2727_s1 + $0x90] sm:$0xff]   ;;  %v2131_v36 = vld [vmem:[%s2727_s1 + $0xd8] sm:$0xff]  }
  0x17   : > { %s2033_s26 = smul.u32 24, %s2741_s5  ;;  %v2120_v29 = vld [vmem:[%s2727_s1 + $0x108] sm:$0xff]   ;;  %v2130_v35 = vld [vmem:[%s2727_s1 + $0x110] sm:$0xff]   ;;  %v2132_v37 = vld [vmem:[%s2727_s1 + $0x158] sm:$0xff]  }
  0x18   : > { %1830 = vmatpush3.bf16.msra.mxu0 %v2096_v5  ;;  %2027 = vmatpush3.bf16.msra.mxu1 %v2096_v5  ;;  %v2133_v39 = vld [vmem:[%s2727_s1 + $0x98] sm:$0xff]   ;;  %v2141_v42 = vld [vmem:[%s2727_s1 + $0xe0] sm:$0xff]   ;;  %v2145_v48 = vld [vmem:[%s2727_s1 + $0xe8] sm:$0xff]  }
  0x19   : > { %1831 = vmatprep.subr.bf16.mxu0 %v2097_v6  ;;  %2020 = vmatprep.subr.bf16.mxu1 %v2097_v6  ;;  %s2405_s10 = scalar_lea.vmem %s2726_s0, %s2033_s26  ;;  %v2134_v41 = vld [vmem:[%s2727_s1 + $0x118] sm:$0xff]   ;;  %v2142_v45 = vld [vmem:[%s2727_s1 + $0x160] sm:$0xff]   ;;  %v2146_v49 = vld [vmem:[%s2727_s1 + $0x168] sm:$0xff]   ;;  %s2620_s26 = scalar_lea.vmem [#allocation3], %s1639_s24 }
  0x1a   : > { %v2109_v11 = vld [vmem:[%s2405_s10 + $0x4] ss:$24 sps:$4 sm:$0xff]   ;;  %v2107_v18 = vld [vmem:[%s2405_s10] ss:$24 sps:$4 sm:$0xff]   ;;  %v2121_v26 = vld [vmem:[%s2405_s10 + $0x34] ss:$24 sps:$4 sm:$0xff]  }
  0x1b   : > { %v2112_v12 = vld [vmem:[%s2405_s10 + $0xc4] ss:$24 sps:$4 sm:$0xff]   ;;  %1041 = vmatprep.mubr.bf16.mxu0 %v2109_v11  ;;  %v2110_v19 = vld [vmem:[%s2405_s10 + $0xc0] ss:$24 sps:$4 sm:$0xff]   ;;  %v2123_v28 = vld [vmem:[%s2405_s10 + $0xf4] ss:$24 sps:$4 sm:$0xff]  }
  0x1c   : > { %1832 = vmatpush3.bf16.msra.mxu0 %v2098_v7  ;;  %2028 = vmatpush3.bf16.msra.mxu1 %v2098_v7  ;;  %v2125_v31 = vld [vmem:[%s2405_s10 + $0x30] ss:$24 sps:$4 sm:$0xff]   ;;  %v2135_v38 = vld [vmem:[%s2405_s10 + $0x64] ss:$24 sps:$4 sm:$0xff]   ;;  %v2139_v43 = vld [vmem:[%s2405_s10 + $0x60] ss:$24 sps:$4 sm:$0xff]  }
  0x1d   : > { %1833 = vmatprep.subr.bf16.mxu0 %v2099_v8  ;;  %2021 = vmatprep.subr.bf16.mxu1 %v2099_v8  ;;  %v2126_v33 = vld [vmem:[%s2405_s10 + $0xf0] ss:$24 sps:$4 sm:$0xff]   ;;  %v2137_v40 = vld [vmem:[%s2405_s10 + $0x124] ss:$24 sps:$4 sm:$0xff]   ;;  %v2140_v44 = vld [vmem:[%s2405_s10 + $0x120] ss:$24 sps:$4 sm:$0xff]  }
  0x1e   : > { %1073 = vmatprep.mubr.bf16.mxu1 %v2112_v12  ;;  %v2143_v46 = vld [vmem:[%s2727_s1 + $0xa0] sm:$0xff]   ;;  %v2149_v50 = vld [vmem:[%s2405_s10 + $0x94] ss:$24 sps:$4 sm:$0xff]   ;;  %v2153_v55 = vld [vmem:[%s2405_s10 + $0x90] ss:$24 sps:$4 sm:$0xff]   ;;  %s1508_s30 = sshll.u32 %s2620_s26, 4  ;;  %s2675_s30 = int_to_ptr.vmem [resolvable:$true] %s1508_s30 }
  0x1f   : > { %v2144_v47 = vld [vmem:[%s2727_s1 + $0x120] sm:$0xff]   ;;  %v2151_v51 = vld [vmem:[%s2405_s10 + $0x154] ss:$24 sps:$4 sm:$0xff]   ;;  %v2154_v56 = vld [vmem:[%s2405_s10 + $0x150] ss:$24 sps:$4 sm:$0xff]   ;;  %s2211_s5 = scalar_lea.vmem %s2675_s30, 1024  ;;  %p2218_p1 = scmp.lt.s32.totalorder %s2675_s30, %s2216_s11 }
  0x20   : > { %1834 = vmatpush3.bf16.msra.mxu0 %v2100_v9  ;;  %2029 = vmatpush3.bf16.msra.mxu1 %v2100_v9  ;;  %v2147_v52 = vld [vmem:[%s2727_s1 + $0xa8] sm:$0xff]   ;;  %v2155_v54 = vld [vmem:[%s2727_s1 + $0xf0] sm:$0xff]   ;;  %v2159_v60 = vld [vmem:[%s2727_s1 + $0xf8] sm:$0xff]   ;;  %p2212_p12 = scmp.ne.s32.totalorder %s2675_s30, %s2211_s5  ;;  %p2219_p2 = scmp.lt.s32.totalorder %s2217_s12, %s2211_s5 }
  0x21   : > { %1835 = vmatprep.subr.bf16.mxu0 %v2101_v10  ;;  %2022 = vmatprep.subr.bf16.mxu1 %v2101_v10  ;;  %v2148_v53 = vld [vmem:[%s2727_s1 + $0x128] sm:$0xff]   ;;  %v2156_v57 = vld [vmem:[%s2727_s1 + $0x170] sm:$0xff]   ;;  %v2160_v61 = vld [vmem:[%s2727_s1 + $0x178] sm:$0xff]  }
  0x22   : > { %v2157_v58 = vld [vmem:[%s2727_s1 + $0xb0] sm:$0xff]   ;;  %v2161_v62 = vld [vmem:[%s2727_s1 + $0xb8] sm:$0xff]   ;;  %v2165_v0 = vld [vmem:[%s2405_s10 + $0xc] ss:$24 sps:$4 sm:$0xff]   ;;  %p2213_p13 = pnand %p2212_p12, %p2359_p4  ;;  %p2220_p3 = por %p2219_p2, %p2218_p1 }
  0x23   : > { %v2158_v59 = vld [vmem:[%s2727_s1 + $0x130] sm:$0xff]   ;;  %v2162_v63 = vld [vmem:[%s2727_s1 + $0x138] sm:$0xff]   ;;  %v2163_v1 = vld [vmem:[%s2405_s10 + $0x8] ss:$24 sps:$4 sm:$0xff]  }
  0x24   : > { %1836 = vmatpush3.bf16.msra.mxu0 %v2102_v13  ;;  %2030 = vmatpush3.bf16.msra.mxu1 %v2102_v13  ;;  %v2168_v2 = vld [vmem:[%s2405_s10 + $0x14] ss:$24 sps:$4 sm:$0xff]   ;;  %v2166_v3 = vld [vmem:[%s2405_s10 + $0x10] ss:$24 sps:$4 sm:$0xff]   ;;  %v2171_v5 = vld [vmem:[%s2405_s10 + $0x44] ss:$24 sps:$4 sm:$0xff]   ;;  %p2214_p0 = pneg %p2213_p13 }
  0x25   : > { %1837 = vmatprep.subr.bf16.mxu0 %v2103_v14  ;;  %2023 = vmatprep.subr.bf16.mxu1 %v2103_v14  ;;  %v2169_v4 = vld [vmem:[%s2405_s10 + $0x3c] ss:$24 sps:$4 sm:$0xff]   ;;  %v2173_v6 = vld [vmem:[%s2405_s10 + $0x38] ss:$24 sps:$4 sm:$0xff]   ;;  %v2175_v8 = vld [vmem:[%s2405_s10 + $0x6c] ss:$24 sps:$4 sm:$0xff]  }
  0x26   : > { %v2174_v7 = vld [vmem:[%s2405_s10 + $0x40] ss:$24 sps:$4 sm:$0xff]   ;;  %v2177_v9 = vld [vmem:[%s2405_s10 + $0x74] ss:$24 sps:$4 sm:$0xff]   ;;  %v2180_v11 = vld [vmem:[%s2405_s10 + $0x70] ss:$24 sps:$4 sm:$0xff]   ;;  %p2221_p5 = pnand %p2220_p3, %p2214_p0 }
  0x27   : > { %v2179_v10 = vld [vmem:[%s2405_s10 + $0x68] ss:$24 sps:$4 sm:$0xff]   ;;  %v2181_v12 = vld [vmem:[%s2405_s10 + $0x9c] ss:$24 sps:$4 sm:$0xff]   ;;  %v2185_v14 = vld [vmem:[%s2405_s10 + $0x98] ss:$24 sps:$4 sm:$0xff]  }
  0x28   : > { %1838 = vmatpush3.bf16.msra.mxu0 %v2104_v15  ;;  %2031 = vmatpush3.bf16.msra.mxu1 %v2104_v15  ;;  %v2183_v13 = vld [vmem:[%s2405_s10 + $0xa4] ss:$24 sps:$4 sm:$0xff]   ;;  %v2186_v15 = vld [vmem:[%s2405_s10 + $0xa0] ss:$24 sps:$4 sm:$0xff]  }
  0x29   : > { %1839 = vmatprep.subr.bf16.mxu0 %v2105_v16  ;;  %2024 = vmatprep.subr.bf16.mxu1 %v2105_v16  ;;  %v2187_v16 = vld [vmem:[%s2405_s10 + $0xcc] ss:$24 sps:$4 sm:$0xff]  }
  0x2c   : > { %1840 = vmatpush3.bf16.msra.mxu0 %v2106_v17  ;;  %2032 = vmatpush3.bf16.msra.mxu1 %v2106_v17  ;;  %v2189_v17 = vld [vmem:[%s2405_s10 + $0xd4] ss:$24 sps:$4 sm:$0xff]  }
  0x2d   : > { %1889 = vmatprep.subr.bf16.mxu1 %v2113_v20  ;;  %1953 = vmatprep.subr.bf16.mxu0 %v2114_v21  ;;  %v2193_v20 = vld [vmem:[%s2405_s10 + $0xfc] ss:$24 sps:$4 sm:$0xff]  }
  0x2e   : > { %v2195_v21 = vld [vmem:[%s2405_s10 + $0x104] ss:$24 sps:$4 sm:$0xff]  }
  0x2f   : > { %1042 = vmatmul.mubr.bf16.vlgmr.msra.gmra.mrb[0].mxu0 %v2107_v18  ;;  %1074 = vmatmul.mubr.bf16.vlgmr.msra.gmra.mrb[0].mxu1 %v2110_v19  ;;  %v2191_v18 = vld [vmem:[%s2405_s10 + $0xc8] ss:$24 sps:$4 sm:$0xff]  }
  0x30   : > { %1890 = vmatpush3.bf16.msra.mxu1 %v2115_v22  ;;  %1954 = vmatpush3.bf16.msra.mxu0 %v2116_v23  ;;  %v2192_v19 = vld [vmem:[%s2405_s10 + $0xd0] ss:$24 sps:$4 sm:$0xff]   ;;  %v2198_v23 = vld [vmem:[%s2405_s10 + $0x100] ss:$24 sps:$4 sm:$0xff]  }
  0x31   : > { %1891 = vmatprep.subr.bf16.mxu1 %v2117_v24  ;;  %1955 = vmatprep.subr.bf16.mxu0 %v2118_v25  ;;  %v2197_v22 = vld [vmem:[%s2405_s10 + $0xf8] ss:$24 sps:$4 sm:$0xff]   ;;  %v2199_v24 = vld [vmem:[%s2405_s10 + $0x12c] ss:$24 sps:$4 sm:$0xff]  }
  0x32   : > { %1049 = vmatprep.mubr.bf16.mxu0 %v2121_v26  ;;  %1081 = vmatprep.mubr.bf16.mxu1 %v2123_v28  ;;  %v2201_v25 = vld [vmem:[%s2405_s10 + $0x134] ss:$24 sps:$4 sm:$0xff]   ;;  %v2203_v26 = vld [vmem:[%s2405_s10 + $0x128] ss:$24 sps:$4 sm:$0xff]  }
  0x33   : > { %v2205_v28 = vld [vmem:[%s2405_s10 + $0x15c] ss:$24 sps:$4 sm:$0xff]  }
  0x34   : > { %1892 = vmatpush3.bf16.msra.mxu1 %v2119_v27  ;;  %1956 = vmatpush3.bf16.msra.mxu0 %v2120_v29  ;;  %v2204_v27 = vld [vmem:[%s2405_s10 + $0x130] ss:$24 sps:$4 sm:$0xff]   ;;  %v2207_v29 = vld [vmem:[%s2405_s10 + $0x164] ss:$24 sps:$4 sm:$0xff]  }
  0x35   : > { %1893 = vmatprep.subr.bf16.mxu1 %v2127_v30  ;;  %1957 = vmatprep.subr.bf16.mxu0 %v2128_v32  ;;  %v2209_v30 = vld [vmem:[%s2405_s10 + $0x158] ss:$24 sps:$4 sm:$0xff]  }
  0x37   : > { %1050 = vmatmul.mubr.bf16.gmra.mrb[4].mxu0 %v2125_v31  ;;  %1082 = vmatmul.mubr.bf16.gmra.mrb[4].mxu1 %v2126_v33  ;;  %v2210_v31 = vld [vmem:[%s2405_s10 + $0x160] ss:$24 sps:$4 sm:$0xff]  }
  0x38   : > { %1894 = vmatpush3.bf16.msra.mxu1 %v2129_v34  ;;  %1958 = vmatpush3.bf16.msra.mxu0 %v2130_v35 }
  0x39   : > { %1895 = vmatprep.subr.bf16.mxu1 %v2131_v36  ;;  %1959 = vmatprep.subr.bf16.mxu0 %v2132_v37 }
  0x3a   : > { %1057 = vmatprep.mubr.bf16.mxu0 %v2135_v38  ;;  %1089 = vmatprep.mubr.bf16.mxu1 %v2137_v40 }
  0x3c   : > { %1896 = vmatpush3.bf16.msra.mxu1 %v2133_v39  ;;  %1960 = vmatpush3.bf16.msra.mxu0 %v2134_v41 }
  0x3d   : > { %1897 = vmatprep.subr.bf16.mxu1 %v2141_v42  ;;  %1961 = vmatprep.subr.bf16.mxu0 %v2142_v45 }
  0x3f   : > { %1058 = vmatmul.mubr.bf16.gmra.mrb[8].mxu0 %v2139_v43  ;;  %1090 = vmatmul.mubr.bf16.gmra.mrb[8].mxu1 %v2140_v44 }
  0x40   : > { %1898 = vmatpush3.bf16.msra.mxu1 %v2143_v46  ;;  %1962 = vmatpush3.bf16.msra.mxu0 %v2144_v47 }
  0x41   : > { %1899 = vmatprep.subr.bf16.mxu1 %v2145_v48  ;;  %1963 = vmatprep.subr.bf16.mxu0 %v2146_v49 }
  0x42   : > { %1065 = vmatprep.mubr.bf16.mxu0 %v2149_v50  ;;  %1097 = vmatprep.mubr.bf16.mxu1 %v2151_v51 }
  0x44   : > { %1900 = vmatpush3.bf16.msra.mxu1 %v2147_v52  ;;  %1964 = vmatpush3.bf16.msra.mxu0 %v2148_v53 }
  0x45   : > { %1901 = vmatprep.subr.bf16.mxu1 %v2155_v54  ;;  %1965 = vmatprep.subr.bf16.mxu0 %v2156_v57 }
  0x47   : > { %1066 = vmatmul.mubr.bf16.gmra.mrb[12].mxu0 %v2153_v55  ;;  %1098 = vmatmul.mubr.bf16.gmra.mrb[12].mxu1 %v2154_v56 }
  0x48   : > { %1902 = vmatpush3.bf16.msra.mxu1 %v2157_v58  ;;  %1966 = vmatpush3.bf16.msra.mxu0 %v2158_v59 }
  0x49   : > { %1903 = vmatprep.subr.bf16.mxu1 %v2159_v60  ;;  %1967 = vmatprep.subr.bf16.mxu0 %v2160_v61 }
  0x4a   : > { %1138 = vmatprep.mubr.bf16.mxu1 %v2165_v0  ;;  %1235 = vmatprep.mubr.bf16.mxu0 %v2168_v2 }
  0x4c   : > { %1904 = vmatpush3.bf16.msra.mxu1 %v2161_v62  ;;  %1968 = vmatpush3.bf16.msra.mxu0 %v2162_v63 }
  0x4f   : > { %1139 = vmatmul.mubr.bf16.vlgmr.msra.gmra.mrb[16].mxu1 %v2163_v1  ;;  %1236 = vmatmul.mubr.bf16.vlgmr.msra.gmra.mrb[16].mxu0 %v2166_v3 }
  0x50   : > { %1146 = vmatprep.mubr.bf16.mxu1 %v2169_v4  ;;  %1243 = vmatprep.mubr.bf16.mxu0 %v2171_v5 }
  0x57   : > { %1147 = vmatmul.mubr.bf16.gmra.mrb[20].mxu1 %v2173_v6  ;;  %1244 = vmatmul.mubr.bf16.gmra.mrb[20].mxu0 %v2174_v7 }
  0x58   : > { %1154 = vmatprep.mubr.bf16.mxu1 %v2175_v8  ;;  %1251 = vmatprep.mubr.bf16.mxu0 %v2177_v9 }
  0x5f   : > { %1155 = vmatmul.mubr.bf16.gmra.mrb[24].mxu1 %v2179_v10  ;;  %1252 = vmatmul.mubr.bf16.gmra.mrb[24].mxu0 %v2180_v11 }
  0x60   : > { %1162 = vmatprep.mubr.bf16.mxu1 %v2181_v12  ;;  %1259 = vmatprep.mubr.bf16.mxu0 %v2183_v13 }
  0x67   : > { %1163 = vmatmul.mubr.bf16.gmra.mrb[28].mxu1 %v2185_v14  ;;  %1260 = vmatmul.mubr.bf16.gmra.mrb[28].mxu0 %v2186_v15 }
  0x68   : > { %1170 = vmatprep.mubr.bf16.mxu1 %v2187_v16  ;;  %1267 = vmatprep.mubr.bf16.mxu0 %v2189_v17 }
  0x6f   : > { %1171 = vmatmul.mubr.bf16.gmra.mrb[32].mxu1 %v2191_v18  ;;  %1268 = vmatmul.mubr.bf16.gmra.mrb[32].mxu0 %v2192_v19 }
  0x70   : > { %1178 = vmatprep.mubr.bf16.mxu1 %v2193_v20  ;;  %1275 = vmatprep.mubr.bf16.mxu0 %v2195_v21 }
  0x77   : > { %1179 = vmatmul.mubr.bf16.gmra.mrb[36].mxu1 %v2197_v22  ;;  %1276 = vmatmul.mubr.bf16.gmra.mrb[36].mxu0 %v2198_v23 }
  0x78   : > { %1186 = vmatprep.mubr.bf16.mxu1 %v2199_v24  ;;  %1283 = vmatprep.mubr.bf16.mxu0 %v2201_v25 }
  0x7f   : > { %1187 = vmatmul.mubr.bf16.gmra.mrb[40].mxu1 %v2203_v26  ;;  %1284 = vmatmul.mubr.bf16.gmra.mrb[40].mxu0 %v2204_v27 }
  0x80   : > { %1194 = vmatprep.mubr.bf16.mxu1 %v2205_v28  ;;  %1291 = vmatprep.mubr.bf16.mxu0 %v2207_v29  ;;  %v2603_v29 = vld [vmem:[%s2728_s2] ss:$0 sm:$0xff] }
  0x87   : > { %1195 = vmatmul.mubr.bf16.gmra.mrb[44].mxu1 %v2209_v30  ;;  %1292 = vmatmul.mubr.bf16.gmra.mrb[44].mxu0 %v2210_v31 }
 0x102   : > { %v1841_v32 = vpop.f32.mrb[0].mxu0  ;;  %v1865_v33 = vpop.f32.mrb[0].mxu1 }
 0x103   : > { %v1842_v34 = vpop.f32.mrb[1].mxu0  ;;  %v1866_v35 = vpop.f32.mrb[1].mxu1 }
 0x104   : > { %v1843_v36 = vadd.f32 %v1842_v34, %v1841_v32  ;;  %v2572_v37 = vadd.f32 %v1866_v35, %v1865_v33  ;;  %v1844_v38 = vpop.f32.mrb[2].mxu0  ;;  %v1868_v39 = vpop.f32.mrb[2].mxu1  ;;  %v2608_v32 = vld [vmem:[%s2729_s3] ss:$0 sm:$0xff] }
 0x105   : > { %v1845_v40 = vpop.f32.mrb[3].mxu0  ;;  %v1869_v41 = vpop.f32.mrb[3].mxu1 }
 0x106   : > { %v1846_v42 = vadd.f32 %v1845_v40, %v1844_v38  ;;  %v2574_v43 = vadd.f32 %v1869_v41, %v1868_v39 }
 0x10a   : > { %v1847_v44 = vpop.f32.mrb[4].mxu0  ;;  %v1871_v45 = vpop.f32.mrb[4].mxu1 }
 0x10b   : > { %v1848_v46 = vpop.f32.mrb[5].mxu0  ;;  %v1872_v47 = vpop.f32.mrb[5].mxu1 }
 0x10c   : > { %v2576_v48 = vadd.f32 %v1848_v46, %v1847_v44  ;;  %v2578_v49 = vadd.f32 %v1872_v47, %v1871_v45  ;;  %v1850_v50 = vpop.f32.mrb[6].mxu0  ;;  %v1874_v51 = vpop.f32.mrb[6].mxu1 }
 0x10d   : > { %v1851_v52 = vpop.f32.mrb[7].mxu0  ;;  %v1875_v53 = vpop.f32.mrb[7].mxu1 }
 0x10e   : > { %v2580_v54 = vadd.f32 %v1851_v52, %v1850_v50  ;;  %v2582_v55 = vadd.f32 %v1875_v53, %v1874_v51 }
 0x112   : > { %v1853_v56 = vpop.f32.mrb[8].mxu0  ;;  %v1877_v57 = vpop.f32.mrb[8].mxu1 }
 0x113   : > { %v1854_v58 = vpop.f32.mrb[9].mxu0  ;;  %v1878_v59 = vpop.f32.mrb[9].mxu1 }
 0x114   : > { %v2584_v60 = vadd.f32 %v1854_v58, %v1853_v56  ;;  %v2586_v61 = vadd.f32 %v1878_v59, %v1877_v57  ;;  %v1856_v62 = vpop.f32.mrb[10].mxu0  ;;  %v1880_v63 = vpop.f32.mrb[10].mxu1 }
 0x115   : > { %v1857_v0 = vpop.f32.mrb[11].mxu0  ;;  %v1881_v1 = vpop.f32.mrb[11].mxu1 }
 0x116   : > { %v2588_v2 = vadd.f32 %v1857_v0, %v1856_v62  ;;  %v2590_v3 = vadd.f32 %v1881_v1, %v1880_v63 }
 0x11a   : > { %v1859_v4 = vpop.f32.mrb[12].mxu0  ;;  %v1883_v5 = vpop.f32.mrb[12].mxu1 }
 0x11b   : > { %v1860_v6 = vpop.f32.mrb[13].mxu0  ;;  %v1884_v7 = vpop.f32.mrb[13].mxu1 }
 0x11c   : > { %v2592_v8 = vadd.f32 %v1860_v6, %v1859_v4  ;;  %v2594_v9 = vadd.f32 %v1884_v7, %v1883_v5  ;;  %v1862_v10 = vpop.f32.mrb[14].mxu0  ;;  %v1886_v11 = vpop.f32.mrb[14].mxu1 }
 0x11d   : > { %v1863_v12 = vpop.f32.mrb[15].mxu0  ;;  %v1887_v13 = vpop.f32.mrb[15].mxu1 }
 0x11e   : > { %v2596_v14 = vadd.f32 %v1863_v12, %v1862_v10  ;;  %v2598_v15 = vadd.f32 %v1887_v13, %v1886_v11 }
 0x122   : > { %v1905_v16 = vpop.f32.mrb[16].mxu1  ;;  %v1969_v17 = vpop.f32.mrb[16].mxu0 }
 0x123   : > { %v1906_v18 = vpop.f32.mrb[17].mxu1  ;;  %v1970_v19 = vpop.f32.mrb[17].mxu0 }
 0x124   : > { %v1907_v20 = vadd.f32 %v1906_v18, %v1905_v16  ;;  %v1971_v21 = vadd.f32 %v1970_v19, %v1969_v17  ;;  %v1908_v22 = vpop.f32.mrb[18].mxu1  ;;  %v1972_v23 = vpop.f32.mrb[18].mxu0 }
 0x125   : > { %v1909_v24 = vpop.f32.mrb[19].mxu1  ;;  %v1973_v25 = vpop.f32.mrb[19].mxu0 }
 0x126   : > { %v1141_v26 = vadd.f32 %v1907_v20, %v1843_v36  ;;  %v1910_v27 = vadd.f32 %v1909_v24, %v1908_v22  ;;  %v1974_v28 = vadd.f32 %v1973_v25, %v1972_v23 }
 0x128   : > { %v1238_v30 = vadd.f32 %v1971_v21, %v1141_v26  ;;  %v1144_v31 = vadd.f32 %v1910_v27, %v1846_v42 }
 0x12a   : > { %v1358_v33 = vmul.f32 %v2603_v29, %v1238_v30  ;;  %v1241_v34 = vadd.f32 %v1974_v28, %v1144_v31  ;;  %v1911_v35 = vpop.f32.mrb[20].mxu1  ;;  %v1975_v36 = vpop.f32.mrb[20].mxu0 }
 0x12b   : > { %v1912_v38 = vpop.f32.mrb[21].mxu1  ;;  %v1976_v39 = vpop.f32.mrb[21].mxu0 }
 0x12c   : > { %v1381_v40 = vadd.f32 %v2608_v32, %v1358_v33  ;;  %v1359_v41 = vmul.f32 %v2603_v29, %v1241_v34  ;;  %v1913_v44 = vadd.f32 %v1912_v38, %v1911_v35  ;;  %v1977_v42 = vadd.f32 %v1976_v39, %v1975_v36  ;;  %v1914_v45 = vpop.f32.mrb[22].mxu1  ;;  %v1978_v46 = vpop.f32.mrb[22].mxu0 }
 0x12d   : > { %v1915_v47 = vpop.f32.mrb[23].mxu1  ;;  %v1979_v50 = vpop.f32.mrb[23].mxu0 }
 0x12e   : > { %v1382_v51 = vadd.f32 %v2608_v32, %v1359_v41  ;;  %v1149_v52 = vadd.f32 %v1913_v44, %v2576_v48  ;;  %v1916_v53 = vadd.f32 %v1915_v47, %v1914_v45  ;;  %v1980_v56 = vadd.f32 %v1979_v50, %v1978_v46 }
 0x12f   : > { %v1397_v57 = vmax.f32 %v1381_v40, 0.0 }
 0x130   : > { %v1398_v58 = vmax.f32 %v1382_v51, 0.0  ;;  %v1246_v59 = vadd.f32 %v1977_v42, %v1149_v52  ;;  %v1152_v62 = vadd.f32 %v1916_v53, %v2580_v54 }
 0x132   : > { %v1781_v63 = vpack.c.bf16 %v1398_v58, %v1397_v57  ;;  %v1360_v0 = vmul.f32 %v2603_v29, %v1246_v59  ;;  %v1249_v1 = vadd.f32 %v1980_v56, %v1152_v62  ;;  %v1917_v4 = vpop.f32.mrb[24].mxu1  ;;  %v1981_v5 = vpop.f32.mrb[24].mxu0 }
 0x133   : > { %v1918_v6 = vpop.f32.mrb[25].mxu1  ;;  %v1982_v7 = vpop.f32.mrb[25].mxu0 }
 0x134   : > { %1782 = vst [vmem:[%s2620_s26] sm:$0xff] %v1781_v63   ;;  %v1383_v48 = vadd.f32 %v2608_v32, %v1360_v0  ;;  %v1361_v10 = vmul.f32 %v2603_v29, %v1249_v1  ;;  %v1919_v11 = vadd.f32 %v1918_v6, %v1917_v4  ;;  %v1983_v12 = vadd.f32 %v1982_v7, %v1981_v5  ;;  %v1920_v13 = vpop.f32.mrb[26].mxu1  ;;  %v1984_v54 = vpop.f32.mrb[26].mxu0 }
 0x135   : > { %v1921_v16 = vpop.f32.mrb[27].mxu1  ;;  %v1985_v17 = vpop.f32.mrb[27].mxu0 }
 0x136   : > { %v1384_v18 = vadd.f32 %v2608_v32, %v1361_v10  ;;  %v1157_v19 = vadd.f32 %v1919_v11, %v2584_v60  ;;  %v1922_v20 = vadd.f32 %v1921_v16, %v1920_v13  ;;  %v1986_v21 = vadd.f32 %v1985_v17, %v1984_v54 }
 0x137   : > { %v1399_v22 = vmax.f32 %v1383_v48, 0.0 }
 0x138   : > { %v1400_v23 = vmax.f32 %v1384_v18, 0.0  ;;  %v1254_v24 = vadd.f32 %v1983_v12, %v1157_v19  ;;  %v1160_v25 = vadd.f32 %v1922_v20, %v2588_v2 }
 0x13a   : > { %v1786_v26 = vpack.c.bf16 %v1400_v23, %v1399_v22  ;;  %v1362_v27 = vmul.f32 %v2603_v29, %v1254_v24  ;;  %v1257_v28 = vadd.f32 %v1986_v21, %v1160_v25  ;;  %v1923_v30 = vpop.f32.mrb[28].mxu1  ;;  %v1987_v31 = vpop.f32.mrb[28].mxu0 }
 0x13b   : > { %v1924_v33 = vpop.f32.mrb[29].mxu1  ;;  %v1988_v34 = vpop.f32.mrb[29].mxu0 }
 0x13c   : > { %1818 = vst [vmem:[%s2620_s26 + $0x8] sm:$0xff] %v1786_v26   ;;  %v1385_v35 = vadd.f32 %v2608_v32, %v1362_v27  ;;  %v1363_v60 = vmul.f32 %v2603_v29, %v1257_v28  ;;  %v1925_v36 = vadd.f32 %v1924_v33, %v1923_v30  ;;  %v1989_v38 = vadd.f32 %v1988_v34, %v1987_v31  ;;  %v1926_v39 = vpop.f32.mrb[30].mxu1  ;;  %v1990_v40 = vpop.f32.mrb[30].mxu0 }
 0x13d   : > { %v1927_v41 = vpop.f32.mrb[31].mxu1  ;;  %v1991_v44 = vpop.f32.mrb[31].mxu0 }
 0x13e   : > { %v1386_v2 = vadd.f32 %v2608_v32, %v1363_v60  ;;  %v1165_v42 = vadd.f32 %v1925_v36, %v2592_v8  ;;  %v1928_v45 = vadd.f32 %v1927_v41, %v1926_v39  ;;  %v1992_v46 = vadd.f32 %v1991_v44, %v1990_v40 }
 0x13f   : > { %v1401_v47 = vmax.f32 %v1385_v35, 0.0 }
 0x140   : > { %v1402_v50 = vmax.f32 %v1386_v2, 0.0  ;;  %v1262_v51 = vadd.f32 %v1989_v38, %v1165_v42  ;;  %v1168_v52 = vadd.f32 %v1928_v45, %v2596_v14 }
 0x142   : > { %v1791_v53 = vpack.c.bf16 %v1402_v50, %v1401_v47  ;;  %v1364_v56 = vmul.f32 %v2603_v29, %v1262_v51  ;;  %v1265_v57 = vadd.f32 %v1992_v46, %v1168_v52  ;;  %v1929_v58 = vpop.f32.mrb[32].mxu1  ;;  %v1993_v59 = vpop.f32.mrb[32].mxu0 }
 0x143   : > { %v1930_v62 = vpop.f32.mrb[33].mxu1  ;;  %v1994_v63 = vpop.f32.mrb[33].mxu0 }
 0x144   : > { %1819 = vst [vmem:[%s2620_s26 + $0x10] sm:$0xff] %v1791_v53   ;;  %v1387_v0 = vadd.f32 %v2608_v32, %v1364_v56  ;;  %v1365_v8 = vmul.f32 %v2603_v29, %v1265_v57  ;;  %v1931_v1 = vadd.f32 %v1930_v62, %v1929_v58  ;;  %v1995_v4 = vadd.f32 %v1994_v63, %v1993_v59  ;;  %v1932_v5 = vpop.f32.mrb[34].mxu1  ;;  %v1996_v6 = vpop.f32.mrb[34].mxu0 }
 0x145   : > { %v1933_v7 = vpop.f32.mrb[35].mxu1  ;;  %v1997_v48 = vpop.f32.mrb[35].mxu0 }
 0x146   : > { %v1388_v14 = vadd.f32 %v2608_v32, %v1365_v8  ;;  %v1173_v10 = vadd.f32 %v1931_v1, %v2572_v37  ;;  %v1934_v11 = vadd.f32 %v1933_v7, %v1932_v5  ;;  %v1998_v12 = vadd.f32 %v1997_v48, %v1996_v6 }
 0x147   : > { %v1403_v13 = vmax.f32 %v1387_v0, 0.0 }
 0x148   : > { %v1404_v54 = vmax.f32 %v1388_v14, 0.0  ;;  %v1270_v16 = vadd.f32 %v1995_v4, %v1173_v10  ;;  %v1176_v17 = vadd.f32 %v1934_v11, %v2574_v43 }
 0x14a   : > { %v1796_v18 = vpack.c.bf16 %v1404_v54, %v1403_v13  ;;  %v1366_v19 = vmul.f32 %v2603_v29, %v1270_v16  ;;  %v1273_v20 = vadd.f32 %v1998_v12, %v1176_v17  ;;  %v1935_v21 = vpop.f32.mrb[36].mxu1  ;;  %v1999_v22 = vpop.f32.mrb[36].mxu0 }
 0x14b   : > { %v1936_v23 = vpop.f32.mrb[37].mxu1  ;;  %v2000_v24 = vpop.f32.mrb[37].mxu0 }
 0x14c   : > { %1820 = vst [vmem:[%s2620_s26 + $0x18] sm:$0xff] %v1796_v18   ;;  %v1389_v25 = vadd.f32 %v2608_v32, %v1366_v19  ;;  %v1367_v37 = vmul.f32 %v2603_v29, %v1273_v20  ;;  %v1937_v26 = vadd.f32 %v1936_v23, %v1935_v21  ;;  %v2001_v27 = vadd.f32 %v2000_v24, %v1999_v22  ;;  %v1938_v28 = vpop.f32.mrb[38].mxu1  ;;  %v2002_v30 = vpop.f32.mrb[38].mxu0 }
 0x14d   : > { %v1939_v31 = vpop.f32.mrb[39].mxu1  ;;  %v2003_v33 = vpop.f32.mrb[39].mxu0 }
 0x14e   : > { %v1390_v43 = vadd.f32 %v2608_v32, %v1367_v37  ;;  %v1181_v34 = vadd.f32 %v1937_v26, %v2578_v49  ;;  %v1940_v35 = vadd.f32 %v1939_v31, %v1938_v28  ;;  %v2004_v60 = vadd.f32 %v2003_v33, %v2002_v30 }
 0x14f   : > { %v1405_v36 = vmax.f32 %v1389_v25, 0.0 }
 0x150   : > { %v1406_v38 = vmax.f32 %v1390_v43, 0.0  ;;  %v1278_v39 = vadd.f32 %v2001_v27, %v1181_v34  ;;  %v1184_v40 = vadd.f32 %v1940_v35, %v2582_v55 }
 0x152   : > { %v1801_v41 = vpack.c.bf16 %v1406_v38, %v1405_v36  ;;  %v1368_v44 = vmul.f32 %v2603_v29, %v1278_v39  ;;  %v1281_v2 = vadd.f32 %v2004_v60, %v1184_v40  ;;  %v1941_v42 = vpop.f32.mrb[40].mxu1  ;;  %v2005_v45 = vpop.f32.mrb[40].mxu0 }
 0x153   : > { %v1942_v46 = vpop.f32.mrb[41].mxu1  ;;  %v2006_v47 = vpop.f32.mrb[41].mxu0 }
 0x154   : > { %1821 = vst [vmem:[%s2620_s26 + $0x20] sm:$0xff] %v1801_v41   ;;  %v1391_v50 = vadd.f32 %v2608_v32, %v1368_v44  ;;  %v1369_v49 = vmul.f32 %v2603_v29, %v1281_v2  ;;  %v1943_v51 = vadd.f32 %v1942_v46, %v1941_v42  ;;  %v2007_v52 = vadd.f32 %v2006_v47, %v2005_v45  ;;  %v1944_v53 = vpop.f32.mrb[42].mxu1  ;;  %v2008_v56 = vpop.f32.mrb[42].mxu0 }
 0x155   : > { %v1945_v57 = vpop.f32.mrb[43].mxu1  ;;  %v2009_v58 = vpop.f32.mrb[43].mxu0 }
 0x156   : > { %v1392_v55 = vadd.f32 %v2608_v32, %v1369_v49  ;;  %v1189_v59 = vadd.f32 %v1943_v51, %v2586_v61  ;;  %v1946_v62 = vadd.f32 %v1945_v57, %v1944_v53  ;;  %v2010_v63 = vadd.f32 %v2009_v58, %v2008_v56 }
 0x157   : > { %v1407_v0 = vmax.f32 %v1391_v50, 0.0 }
 0x158   : > { %v1408_v8 = vmax.f32 %v1392_v55, 0.0  ;;  %v1286_v1 = vadd.f32 %v2007_v52, %v1189_v59  ;;  %v1192_v4 = vadd.f32 %v1946_v62, %v2590_v3 }
 0x15a   : > { %v1806_v5 = vpack.c.bf16 %v1408_v8, %v1407_v0  ;;  %v1370_v6 = vmul.f32 %v2603_v29, %v1286_v1  ;;  %v1289_v7 = vadd.f32 %v2010_v63, %v1192_v4  ;;  %v1947_v48 = vpop.f32.mrb[44].mxu1  ;;  %v2011_v14 = vpop.f32.mrb[44].mxu0 }
 0x15b   : > { %v1948_v10 = vpop.f32.mrb[45].mxu1  ;;  %v2012_v11 = vpop.f32.mrb[45].mxu0 }
 0x15c   : > { %1822 = vst [vmem:[%s2620_s26 + $0x28] sm:$0xff] %v1806_v5   ;;  %v1393_v12 = vadd.f32 %v2608_v32, %v1370_v6  ;;  %v1371_v61 = vmul.f32 %v2603_v29, %v1289_v7  ;;  %v1949_v13 = vadd.f32 %v1948_v10, %v1947_v48  ;;  %v2013_v54 = vadd.f32 %v2012_v11, %v2011_v14  ;;  %v1950_v16 = vpop.f32.mrb[46].mxu1  ;;  %v2014_v17 = vpop.f32.mrb[46].mxu0 }
 0x15d   : > { %v1951_v18 = vpop.f32.mrb[47].mxu1  ;;  %v2015_v3 = vpop.f32.mrb[47].mxu0 }
 0x15e   : > { %v1394_v19 = vadd.f32 %v2608_v32, %v1371_v61  ;;  %v1197_v20 = vadd.f32 %v1949_v13, %v2594_v9  ;;  %v1952_v21 = vadd.f32 %v1951_v18, %v1950_v16  ;;  %v2016_v22 = vadd.f32 %v2015_v3, %v2014_v17 }
 0x15f   : > { %v1409_v23 = vmax.f32 %v1393_v12, 0.0 }
 0x160   : > { %v1410_v24 = vmax.f32 %v1394_v19, 0.0  ;;  %v1294_v25 = vadd.f32 %v2013_v54, %v1197_v20  ;;  %v1200_v37 = vadd.f32 %v1952_v21, %v2598_v15 }
 0x162   : > { %v1811_v26 = vpack.c.bf16 %v1410_v24, %v1409_v23  ;;  %v1372_v27 = vmul.f32 %v2603_v29, %v1294_v25  ;;  %v1297_v28 = vadd.f32 %v2016_v22, %v1200_v37 }
 0x164   : > { %1823 = vst [vmem:[%s2620_s26 + $0x30] sm:$0xff] %v1811_v26   ;;  %v1395_v30 = vadd.f32 %v2608_v32, %v1372_v27  ;;  %v1373_v31 = vmul.f32 %v2603_v29, %v1297_v28 }
 0x166   : > { %v1396_v9 = vadd.f32 %v2608_v32, %v1373_v31  ;;  %v1411_v33 = vmax.f32 %v1395_v30, 0.0 }
 0x168   : > { %v1412_v43 = vmax.f32 %v1396_v9, 0.0 }
 0x16a   : > { %v1816_v15 = vpack.c.bf16 %v1412_v43, %v1411_v33 }
 0x16c   : > { %1824 = vst [vmem:[%s2620_s26 + $0x38] sm:$0xff] %v1816_v15  }
 0x16d   : > { %2224 = shalt.err (!%p2221_p5)
}
 0x16e   : > { %s2225_s10 = scalar_lea.hbm %s2673_s8, 1024  ;;  %s2229_s21 = scalar_lea.hbm %s2730_s4, 4096 }
 0x16f   : > { %p2226_p6 = scmp.ne.s32.totalorder %s2673_s8, %s2225_s10  ;;  %p2230_p10 = scmp.lt.u32.totalorder %s2673_s8, %s2730_s4 }
 0x170   : > { %p2231_p11 = scmp.lt.u32.totalorder %s2229_s21, %s2225_s10  ;;  %p2233_p13 = scmp.lt.u32.totalorder %s2225_s10, %s2673_s8 }
 0x171   : > { %p2227_p7 = pnand %p2226_p6, %p2359_p4 }
 0x172   : > { %p2232_p12 = por %p2231_p11, %p2230_p10 }
 0x173   : > { %p2228_p9 = pneg %p2227_p7 }
 0x174   : > { %p2234_p0 = por %p2233_p13, %p2232_p12 }
 0x176   : > { %p2235_p1 = pnand %p2234_p0, %p2228_p9 }
 0x178   : > { %2238 = shalt.err (!%p2235_p1)
}
 0x179   : > { %s2292_s26 = smov 64   ;;  %s2293_s29 = smov 4  }
 0x17a   : > { %2034 = dma.vmem_to_hbm [thread:$0]  (%p2359_p4), %s2675_s30, 1024, %s2673_s8, %s2680_s9, %s2292_s26, %s2292_s26, %s2293_s29  }
 0x17b PF: > { %p2040_p2 = scmp.ge.s32.totalorder %s2289_s20, 2  ;;  %s1523_s6 = sand.u32 1, %s2269_s15  }
 0x17c   : > { %s1524_s7 = scalar_lea.sflag [#allocation4], %s1523_s6 }
 0x17d   : > { %p2037_p3 = pnand %p2040_p2, %p2366_p8 }
 0x17f   : > { %2264 = dma.done.wait (!%p2037_p3), %s1524_s7, 1024  }
 0x180   : > { %2266 = vsyncadd (!%p2037_p3), %s1524_s7, 4294966272  ;;  %s17_s20 = sadd.s32 1, %s2289_s20   ;;  %s2733_s15 = smov %s2273_s16 }
 0x181   : > { %p14_p5 = scmp.ge.s32.totalorder %s17_s20, 6   ;;  %s2734_s16 = smov %s2277_s17 }
 0x182   : > { %s2735_s17 = smov %s2372_s28  ;;  %s2736_s18 = smov %s2285_s19 }
 0x183   : > { %s2737_s19 = smov %s2739_s23  ;;  %16 = sbr.rel (!%p14_p5) target bundleno = 4 (0x4), region = 88 }
 0x18a   :  { %1529 = vsyncpa [#allocation4], 1 }
 0x18b   :  { %1531 = vsyncpa [#allocation4 + $0x1], 1 }

</bundles_post_ra>
